<compile_context>
chip_gen: v7x
topology: tpu7x:2x2x1
jax: 0.10.0
libtpu: 0.0.40
codegen_flags: <defaults>
</compile_context>

<pallas_src>
import jax
import jax.numpy as jnp
from jax.experimental import pallas as pl
from jax.experimental.pallas import tpu as pltpu


def _lstm_step_kernel(hist_ref, x_ref, wih_ref, b_ref, hc_ref):
    """Fused concat + single LSTM step with zero initial state.

    hist_ref : (B1, C)   f32  VMEM  -- history[:, 0, :]
    x_ref    : (B2, C)   f32  VMEM  -- x.view(-1, C)
    wih_ref  : (C, 4H)   bf16 VMEM  -- transposed weight_ih_l0
    b_ref    : (1, 4H)   f32  VMEM  -- bias_ih_l0 + bias_hh_l0
    hc_ref   : (B, 2H)   f32  VMEM  -- output slab [h | c], B = B1 + B2
    """
    H = hc_ref.shape[-1] // 2

    # torch.concat((history, x)) fused into the kernel (registers only).
    xs = jnp.concatenate((hist_ref[...], x_ref[...]), axis=0)            # (B, C) f32

    # Single MXU matmul, bf16 operands / f32 accumulation.  The recurrent
    # h_prev @ W_hh term is identically zero (zero init state, T == 1) and is
    # therefore omitted entirely.
    gates = (
        jnp.dot(xs.astype(wih_ref.dtype), wih_ref[...],
                preferred_element_type=jnp.float32)
        + b_ref[...]
    )                                                                     # (B, 4H) f32

    # PyTorch gate order along the 4H lanes: [i | f | g | o].
    # Full-slab activations (one EUP pass each over the whole vreg); g is
    # aligned with i by a half-width lane rotation on the XLU (2H == -2H mod
    # 4H, so the rotate direction convention does not matter).
    sig = jax.nn.sigmoid(gates)                                # [s(i) s(f) s(g) s(o)]
    tanh_rolled = jnp.tanh(pltpu.roll(gates, shift=2 * H, axis=1))
    #                                                          [t(g) t(o) t(i) t(f)]
    prod = sig * tanh_rolled                       # lanes 0:H == s(i)*t(g) == c_new

    c_new = prod[:, 0:H]                                       # f * c_prev == 0 exactly
    h_new = sig[:, 3 * H:4 * H] * jnp.tanh(c_new)

    # One lane-dense store of the combined [h | c] slab -> one output DMA.
    hc_ref[...] = jnp.concatenate((h_new, c_new), axis=1).astype(hc_ref.dtype)


def _lstm_block_forward(x, history, wih_t, bias):
    """Jitted forward: fused reshape/concat + single-step LSTM Pallas kernel."""
    C, H4 = wih_t.shape
    H = H4 // 4

    # x.view((-1, 1) + obs_space) with prod(obs_space) == C; seq_len == 1 so the
    # kernel consumes plain (rows, C) slabs.
    x_rows = x.reshape(-1, C).astype(jnp.float32)                         # (B2, C)
    hist_rows = history.reshape(-1, C).astype(jnp.float32)                # (B1, C)
    B = hist_rows.shape[0] + x_rows.shape[0]

    vmem = pl.BlockSpec(memory_space=pltpu.MemorySpace.VMEM)
    hc = pl.pallas_call(
        _lstm_step_kernel,
        out_shape=jax.ShapeDtypeStruct((B, 2 * H), jnp.float32),
        in_specs=[vmem, vmem, vmem, vmem],
        out_specs=vmem,
    )(hist_rows, x_rows, wih_t, bias)

    # PyTorch nn.LSTM(batch_first=True) return structure, all built from the
    # single (B, 2H) kernel output buffer:
    #   output (B, 1, H); h_n, c_n (1, B, H);  h_n[0] == output[:, 0, :].
    h = hc[:, :H]
    c = hc[:, H:]
    return h[:, None, :], (h[None, :, :], c[None, :, :])


class LSTMBlockPallas:
    """JAX/Pallas port of LSTMBlock (stateless T==1, zero-init-state call only)."""

    def __init__(self, in_channel, frame, out_channel, obs_space, key):
        self.obs_space = tuple(obs_space)
        self.frame = frame
        self.in_channel = in_channel
        self.hidden = out_channel

        k1, k2, k3, k4 = jax.random.split(key, 4)
        bound = 1.0 / (out_channel ** 0.5)  # nn.LSTM default: U(-1/sqrt(H), 1/sqrt(H))
        # PyTorch-layout parameters (kept for the reference check).
        self.w_ih = jax.random.uniform(k1, (4 * out_channel, in_channel),
                                       minval=-bound, maxval=bound, dtype=jnp.float32)
        self.w_hh = jax.random.uniform(k2, (4 * out_channel, out_channel),
                                       minval=-bound, maxval=bound, dtype=jnp.float32)
        self.b_ih = jax.random.uniform(k3, (4 * out_channel,),
                                       minval=-bound, maxval=bound, dtype=jnp.float32)
        self.b_hh = jax.random.uniform(k4, (4 * out_channel,),
                                       minval=-bound, maxval=bound, dtype=jnp.float32)

        # Kernel-layout parameters, precomputed once.  W_hh never contributes
        # (T == 1, zero init state) and is not shipped to the kernel.
        # Gate-column order [i, f, g, o] of w_ih MUST be preserved here.
        self.wih_t = jnp.transpose(self.w_ih).astype(jnp.bfloat16)          # (C, 4H) bf16
        self.bias = (self.b_ih + self.b_hh).astype(jnp.float32).reshape(1, 4 * out_channel)

        # One compiled executable per (x, history) shape.
        self._forward = jax.jit(_lstm_block_forward)

    def __call__(self, x, history):
        return self._forward(x, history, self.wih_t, self.bias)


def _reference_lstm(x_btc, w_ih, w_hh, b_ih, b_hh):
    """Pure-JAX f32 reference with FULL PyTorch nn.LSTM math (zero init state)."""
    B, T, C = x_btc.shape
    H = w_hh.shape[1]
    h = jnp.zeros((B, H), jnp.float32)
    c = jnp.zeros((B, H), jnp.float32)
    outs = []
    for t in range(T):
        g = x_btc[:, t, :] @ w_ih.T + h @ w_hh.T + b_ih + b_hh
        i = jax.nn.sigmoid(g[:, 0 * H:1 * H])
        f = jax.nn.sigmoid(g[:, 1 * H:2 * H])
        gg = jnp.tanh(g[:, 2 * H:3 * H])
        o = jax.nn.sigmoid(g[:, 3 * H:4 * H])
        c = f * c + i * gg
        h = o * jnp.tanh(c)
        outs.append(h)
    return jnp.stack(outs, axis=1), h, c


if __name__ == "__main__":
    key = jax.random.PRNGKey(0)
    k_param, k_x, k_hist = jax.random.split(key, 3)

    in_channel = 32              # LSTM input_size
    out_channel = 32             # LSTM hidden_size
    frame = 1
    obs_space = (in_channel,)    # view((-1, 1) + obs_space) must yield (N, 1, C)

    block = LSTMBlockPallas(in_channel, frame, out_channel, obs_space, k_param)

    n_new = 4
    n_hist = 4
    x = jax.random.normal(k_x, (n_new, in_channel), dtype=jnp.float32)
    history = jax.random.normal(k_hist, (n_hist, 1, in_channel), dtype=jnp.float32)

    out, (h_n, c_n) = block(x, history)
    out = jax.block_until_ready(out)
    h_n = jax.block_until_ready(h_n)
    c_n = jax.block_until_ready(c_n)

    H = out_channel
    B = n_hist + n_new
    assert out.shape == (B, 1, H)
    assert h_n.shape == (1, B, H)
    assert c_n.shape == (1, B, H)

    x_cat = jnp.concatenate((history, x.reshape((-1, 1) + obs_space)), axis=0)

    # Check 1 (loose tol, bf16 matmul operands): full f32 LSTM math including
    # the recurrent / f*c terms the kernel provably skips.
    ref_out, ref_h, ref_c = _reference_lstm(x_cat, block.w_ih, block.w_hh,
                                            block.b_ih, block.b_hh)
    assert jnp.allclose(out, ref_out, atol=3e-2), "output mismatch vs f32 reference"
    assert jnp.allclose(h_n[0], ref_h, atol=3e-2), "h_n mismatch vs f32 reference"
    assert jnp.allclose(c_n[0], ref_c, atol=3e-2), "c_n mismatch vs f32 reference"

    # Check 2 (tight tol): reference using the same bf16-operand / f32-accumulate
    # matmul numerics as the kernel's MXU path.
    g = jnp.dot(x_cat[:, 0, :].astype(jnp.bfloat16), block.wih_t,
                preferred_element_type=jnp.float32) + block.bias
    i_r = jax.nn.sigmoid(g[:, 0 * H:1 * H])
    g_r = jnp.tanh(g[:, 2 * H:3 * H])
    o_r = jax.nn.sigmoid(g[:, 3 * H:4 * H])
    c_r = i_r * g_r
    h_r = o_r * jnp.tanh(c_r)
    assert jnp.allclose(h_n[0], h_r, atol=2e-3), "h_n mismatch vs bf16-matched reference"
    assert jnp.allclose(c_n[0], c_r, atol=2e-3), "c_n mismatch vs bf16-matched reference"
    assert jnp.allclose(out[:, 0, :], h_n[0], atol=0.0), "out / h_n inconsistency"

    print("KERNEL_OK")
</pallas_src>

<mosaic_0001>
module attributes {stable_mosaic.version = 11 : i64} {
  func.func @_lstm_step_kernel(%arg0: memref<4x32xf32, #tpu.memory_space<vmem>>, %arg1: memref<4x32xf32, #tpu.memory_space<vmem>>, %arg2: memref<32x128xbf16, #tpu.memory_space<vmem>>, %arg3: memref<1x128xf32, #tpu.memory_space<vmem>>, %arg4: memref<8x64xf32, #tpu.memory_space<vmem>>) attributes {dimension_semantics = [], scalar_prefetch = 0 : i64, scratch_operands = 0 : i64, tpu.core_type = #tpu.core_type<tc>} {
    %c0 = arith.constant 0 : index
    %c0_0 = arith.constant 0 : index
    %0 = vector.load %arg0[%c0, %c0_0] : memref<4x32xf32, #tpu.memory_space<vmem>>, vector<4x32xf32>
    %c0_1 = arith.constant 0 : index
    %c0_2 = arith.constant 0 : index
    %1 = vector.load %arg1[%c0_1, %c0_2] : memref<4x32xf32, #tpu.memory_space<vmem>>, vector<4x32xf32>
    %2 = tpu.concatenate %0, %1 in 0 : vector<4x32xf32>, vector<4x32xf32> -> vector<8x32xf32>
    %3 = arith.truncf %2 : vector<8x32xf32> to vector<8x32xbf16>
    %c0_3 = arith.constant 0 : index
    %c0_4 = arith.constant 0 : index
    %4 = vector.load %arg2[%c0_3, %c0_4] : memref<32x128xbf16, #tpu.memory_space<vmem>>, vector<32x128xbf16>
    %cst = arith.constant dense<0.000000e+00> : vector<8x128xf32>
    %5 = tpu.matmul %3, %4, %cst {dimension_numbers = #tpu.dot_dimension_numbers<[1], [0], [0], [1], [0, 0, 1, 1], [], []>} : vector<8x32xbf16>, vector<32x128xbf16>, vector<8x128xf32> -> vector<8x128xf32>
    %c0_5 = arith.constant 0 : index
    %c0_6 = arith.constant 0 : index
    %6 = vector.load %arg3[%c0_5, %c0_6] : memref<1x128xf32, #tpu.memory_space<vmem>>, vector<1x128xf32>
    %7 = vector.broadcast %6 : vector<1x128xf32> to vector<8x128xf32>
    %8 = arith.addf %5, %7 : vector<8x128xf32>
    %9 = arith.negf %8 : vector<8x128xf32>
    %10 = math.exp %9 : vector<8x128xf32>
    %cst_7 = arith.constant 1.000000e+00 : f32
    %11 = vector.broadcast %cst_7 : f32 to vector<8x128xf32>
    %12 = arith.addf %11, %10 : vector<8x128xf32>
    %13 = arith.divf %11, %12 : vector<8x128xf32>
    %c64_i32 = arith.constant 64 : i32
    %14 = tpu.dynamic_rotate %8 by %c64_i32 dim 1 : vector<8x128xf32>, i32 -> vector<8x128xf32>
    %15 = math.tanh %14 : vector<8x128xf32>
    %16 = arith.mulf %13, %15 : vector<8x128xf32>
    %17 = vector.extract_strided_slice %16 {offsets = [0, 0], sizes = [8, 32], strides = [1, 1]} : vector<8x128xf32> to vector<8x32xf32>
    %18 = vector.extract_strided_slice %13 {offsets = [0, 96], sizes = [8, 32], strides = [1, 1]} : vector<8x128xf32> to vector<8x32xf32>
    %19 = math.tanh %17 : vector<8x32xf32>
    %20 = arith.mulf %18, %19 : vector<8x32xf32>
    %21 = tpu.concatenate %20, %17 in 1 : vector<8x32xf32>, vector<8x32xf32> -> vector<8x64xf32>
    %c0_8 = arith.constant 0 : index
    %c0_9 = arith.constant 0 : index
    %22 = vector.load %arg4[%c0_8, %c0_9] : memref<8x64xf32, #tpu.memory_space<vmem>>, vector<8x64xf32>
    tpu.vector_store %arg4[%c0_8, %c0_9], %21 {strides = array<i32>} : memref<8x64xf32, #tpu.memory_space<vmem>>, vector<8x64xf32>,
    return
  }
}

</mosaic_0001>

<bundles_post_ra>
// kernel: _lstm_block_forward.1
= control target key start
LH: loop header
LB: loop body
LE: loop exit
PB: predicated region body
PF: predicated region fallthrough
CT: control target
= control target key end

     0   :  { %9 = vsyncpa [#allocation3], 0  ;;  %s309_s0 = inlined_call_operand.vmem [shape: f32[4,32], index: 0, kind: input, shape index: {}]   ;;  %s310_s1 = inlined_call_operand.hbm [shape: f32[4,32], index: 1, kind: input, shape index: {}]   ;;  %s311_s2 = inlined_call_operand.hbm [shape: bf16[32,128], index: 2, kind: input, shape index: {}]   ;;  %s312_s3 = inlined_call_operand.vmem [shape: f32[1,128], index: 3, kind: input, shape index: {}]   ;;  %s313_s4 = inlined_call_operand.vmem [shape: f32[8,64], index: 4, kind: output, shape index: {}]  }
   0x1   :  { %10 = vsyncpa [#allocation5], 0  ;;  %s234_s15 = smov [#allocation2]   ;;  %s235_s17 = smov [#allocation4]  }
   0x2   :  { %s19_s16 = sshll.u32 %s234_s15, 4  ;;  %s28_s18 = sshll.u32 %s235_s17, 4  ;;  %s20_s16 = int_to_ptr.vmem [resolvable:$true] %s19_s16  ;;  %s267_s18 = int_to_ptr.vmem [resolvable:$true] %s28_s18 }
   0x3   :  { %s186_s21 = scalar_lea.hbm %s310_s1, 64 }
   0x4   :  { %p187_p0 = scmp.ne.s32.totalorder %s310_s1, %s186_s21  ;;  %p190_p1 = scmp.lt.u32.totalorder %s186_s21, %s310_s1 }
   0x6   :  { %p192_p2 = pnand %p190_p1, %p187_p0 }
   0x8   :  { %195 = shalt.err (!%p192_p2)
}
   0x9   :  { %s196_s26 = scalar_lea.vmem %s20_s16, 64  ;;  %p201_p4 = scmp.lt.s32.totalorder %s20_s16, %s20_s16 }
   0xa   :  { %p197_p3 = scmp.ne.s32.totalorder %s20_s16, %s196_s26  ;;  %p202_p5 = scmp.lt.s32.totalorder %s196_s26, %s196_s26 }
   0xc   :  { %p203_p6 = por %p202_p5, %p201_p4 }
   0xe   :  { %p204_p7 = pnand %p203_p6, %p197_p3 }
  0x10   :  { %207 = shalt.err (!%p204_p7)
}
  0x11   :  { %22 = dma.hbm_to_vmem [thread:$0]  %s310_s1, 64, %s20_s16, [#allocation3]  }
  0x12   :  { %s208_s5 = scalar_lea.hbm %s311_s2, 256 }
  0x13   :  { %p209_p8 = scmp.ne.s32.totalorder %s311_s2, %s208_s5  ;;  %p212_p9 = scmp.lt.u32.totalorder %s208_s5, %s311_s2 }
  0x15   :  { %p214_p10 = pnand %p212_p9, %p209_p8 }
  0x17   :  { %217 = shalt.err (!%p214_p10)
}
  0x18   :  { %s218_s10 = scalar_lea.vmem %s267_s18, 256  ;;  %p223_p12 = scmp.lt.s32.totalorder %s267_s18, %s267_s18 }
  0x19   :  { %p219_p11 = scmp.ne.s32.totalorder %s267_s18, %s218_s10  ;;  %p224_p13 = scmp.lt.s32.totalorder %s218_s10, %s218_s10 }
  0x1b   :  { %p225_p0 = por %p224_p13, %p223_p12 }
  0x1d   :  { %p226_p1 = pnand %p225_p0, %p219_p11 }
  0x1f   :  { %229 = shalt.err (!%p226_p1)
}
  0x20   :  { %s236_s1 = smov 64   ;;  %s237_s11 = smov 4  }
  0x21   :  { %34 = dma.hbm_to_vmem [thread:$0]  %s311_s2, 256, %s267_s18, [#allocation5], %s236_s1, %s236_s1, %s237_s11  }
  0x22   :  { %230 = dma.done.wait [#allocation3], 64  }
  0x23   :  { %231 = vsyncadd [#allocation3], 4294967232 }
  0x24   :  { %232 = dma.done.wait [#allocation5], 256  }
  0x25   :  { %233 = vsyncadd [#allocation5], 4294967040  ;;  %v238_v0 = vmov 0.0   ;;  %vm239_vm0 = vmmov 0   ;;  %v176_v1 = vld [vmem:[#allocation4] sm:$0xff]   ;;  %v177_v2 = vld [vmem:[#allocation4 + $0x8] sm:$0xff]  }
  0x26   :  { %160 = vmatprep.subr.bf16.mxu0 %v238_v0  ;;  %164 = vmatprep.mubr.msk.bf16.mxu0 %vm239_vm0, %v238_v0  ;;  %v44_v3 = vld [vmem:[%s309_s0] sm:$0xf]  ;;  %vm49_vm1 = vcmask 1043456   ;;  %vm75_vm2 = vcmask 261120   ;;  %s240_s0 = smov 96   ;;  %vm144_vm3 = vcmask 523264  }
  0x27   :  { %161 = vmatpush3.bf16.msra.mxu0 %v176_v1  ;;  %v45_v4 = vld [vmem:[#allocation2] sm:$0xf] }
  0x28   :  { %162 = vmatprep.subr.bf16.mxu0 %v238_v0  ;;  %v47_v5 = vrot.slane %v45_v4, 4  ;;  %v152_v8 = vld [vmem:[%s312_s3] ss:$0 sm:$0xff]  ;;  %s241_s3 = smov 32  }
  0x2a   :  { %v50_v6 = vsel %vm49_vm1, %v44_v3, %v47_v5 }
  0x2b   :  { %163 = vmatpush3.bf16.msra.mxu0 %v177_v2  ;;  %v51_v7 = vpack.c.bf16 %v50_v6, %v50_v6 }
  0x2e   :  { %165 = vmatmul.mubr.msk.bf16.vlgmr.msra.gmra.mrb[0].mxu0 %vm75_vm2, %v51_v7 }
 0x101   :  { %v113_v9 = vpop.f32.mrb[0].mxu0 }
 0x102   :  { %v114_v10 = vadd.f32 %v152_v8, %v113_v9  ;;  %v166_v11 = vpop.f32.mrb[1].mxu0 }
 0x103   :  { %v116_v12 = vpop.f32.mrb[2].mxu0 }
 0x104   :  { %125 = vrot.lane.b32.xlu0 %v114_v10, %s236_s1  ;;  %v167_v13 = vpop.f32.mrb[3].mxu0  ;;  %v156_v14 = vmul.f32 -1.442695, %v114_v10 }
 0x106   :  { %178 = vpow2.f32 %v156_v14 }
 0x110   :  { %v179_v15 = vpop.eup %178 }
 0x111   :  { %v122_v16 = vadd.f32 1.0, %v179_v15 }
 0x113   :  { %180 = vrcp.f32 %v122_v16 }
 0x11d   :  { %v181_v18 = vpop.eup %180 }
 0x176   :  { %v126_v17 = vpop.permute.xlu0 %125 }
 0x177   :  { %182 = vtanh.f32 %v126_v17 }
 0x181   :  { %v183_v19 = vpop.eup %182 }
 0x182   :  { %v128_v20 = vmul.f32 %v183_v19, %v181_v18 }
 0x184   :  { %184 = vtanh.f32 %v128_v20 }
 0x18e   :  { %v185_v21 = vpop.eup %184 }
 0x18f   :  { %131 = vrot.lane.b32.xlu0 %v185_v21, %s240_s0 }
 0x201   :  { %v132_v22 = vpop.permute.xlu0 %131 }
 0x202   :  { %v134_v23 = vmul.f32 %v181_v18, %v132_v22 }
 0x204   :  { %136 = vrot.lane.b32.xlu1 %v134_v23, %s241_s3 }
 0x208   :  { %140 = vrot.lane.b32.xlu1 %v128_v20, %s241_s3 }
 0x276   :  { %v137_v24 = vpop.permute.xlu1 %136 }
 0x27a   :  { %v141_v25 = vpop.permute.xlu1 %140 }
 0x27b   :  { %v143_v26 = vsel %vm75_vm2, %v137_v24, %v141_v25 }
 0x27c   :  { %145 = vst.msk [vmem:[%s313_s4] sm:$0xff] %vm144_vm3, %v143_v26 }
 0x27d   :  { %150 = vsyncpa [#allocation3], 1 }
 0x27e   :  { %151 = vsyncpa [#allocation5], 1 }

</bundles_post_ra>
